<compile_context>
chip_gen: v5e
topology: v5e:2x2
jax: 0.10.0
libtpu: 0.0.40
codegen_flags: <defaults>
</compile_context>

<pallas_src>
import functools

import jax
import jax.numpy as jnp
import numpy as np
from jax.experimental import pallas as pl
from jax.experimental.pallas import tpu as pltpu


def _mix32(x):
    """murmur3-style 32-bit finalizer (cheap integer VPU ops, good avalanche)."""
    x = x ^ (x >> 16)
    x = x * jnp.uint32(0x7FEB352D)
    x = x ^ (x >> 15)
    x = x * jnp.uint32(0x846CA68B)
    x = x ^ (x >> 16)
    return x


def _dropout_linear_kernel(seed_ref, x_ref, w_ref, bsum_ref, o_ref, *,
                           drop_threshold, inv_keep_prob, out_scale, tm, K):
    mi = pl.program_id(0)   # row-tile index        ("parallel")
    si = pl.program_id(1)   # dropout-sample index  ("arbitrary" reduction)

    @pl.when(si == 0)
    def _():
        o_ref[...] = jnp.zeros_like(o_ref)

    x = x_ref[...]
    if drop_threshold > 0:  # static: skip all mask math entirely when p == 0
        # Counter-based stateless PRNG: unique counter per (global row, col),
        # salted by (seed, sample) only — never by any output-column tiling.
        row = jax.lax.broadcasted_iota(jnp.int32, (tm, K), 0) + mi * tm
        col = jax.lax.broadcasted_iota(jnp.int32, (tm, K), 1)
        idx = (row * K + col).astype(jnp.uint32)
        salt = (seed_ref[0].astype(jnp.uint32)
                + si.astype(jnp.uint32) * jnp.uint32(0x9E3779B9))
        bits = _mix32(idx ^ _mix32(salt * jnp.uint32(0x85EBCA6B)))
        keep = bits >= jnp.uint32(drop_threshold)
        x = jnp.where(keep, x * inv_keep_prob, 0.0)

    # bf16 x bf16 -> f32 MXU matmul, accumulated directly into the f32 output block.
    o_ref[...] += jnp.dot(x.astype(jnp.bfloat16), w_ref[0],
                          preferred_element_type=jnp.float32)

    @pl.when(si == pl.num_programs(1) - 1)
    def _():
        # Scale once and add the hoisted (pre-scaled) bias sum once.
        o_ref[...] = o_ref[...] * out_scale + bsum_ref[...]


def _pick_row_tile(M):
    """Largest MXU/VMEM-friendly row tile that divides M (fallback: resident)."""
    if M <= 512:
        return M
    for t in (512, 256, 128):
        if M % t == 0:
            return t
    return M  # still correct, just un-tiled rows


def dropout_linear(x2d, weights, biases, *, dropout_prob, msd_average, seed):
    """x2d: (M, K), weights: (S, K, N), biases: (S, N) -> (M, N)."""
    M, K = x2d.shape
    S, _, N = weights.shape
    assert 0.0 <= dropout_prob < 1.0
    keep_prob = 1.0 - float(dropout_prob)
    out_scale = (1.0 / S) if msd_average else 1.0
    drop_threshold = min(int(round(float(dropout_prob) * 2.0 ** 32)), 2 ** 32 - 1)

    tm = _pick_row_tile(M)
    grid = (M // tm, S)

    # Hoisted bias: single pre-scaled (1, N) vector added at the last S step.
    b_sum = (jnp.sum(biases.astype(jnp.float32), axis=0) * out_scale).reshape(1, N)
    w_bf16 = weights.astype(jnp.bfloat16)        # MXU-native, half the DMA bytes
    seed_arr = jnp.array([seed], dtype=jnp.int32)

    kernel = functools.partial(
        _dropout_linear_kernel,
        drop_threshold=drop_threshold,
        inv_keep_prob=1.0 / keep_prob,
        out_scale=out_scale, tm=tm, K=K)

    # NOTE: for best MXU/lane utilization K and N should be padded to multiples
    # of 128 (256 on v6e/v7x) at the model level; the kernel is correct either way.
    out = pl.pallas_call(
        kernel,
        out_shape=jax.ShapeDtypeStruct((M, N), jnp.float32),
        grid_spec=pltpu.PrefetchScalarGridSpec(
            num_scalar_prefetch=1,                                     # seed -> SMEM
            grid=grid,
            in_specs=[
                pl.BlockSpec((tm, K), lambda m, s, seed: (m, 0)),      # x row tile
                pl.BlockSpec((1, K, N), lambda m, s, seed: (s, 0, 0)),  # W_s (bf16)
                pl.BlockSpec((1, N), lambda m, s, seed: (0, 0)),       # sum(b)*scale
            ],
            out_specs=pl.BlockSpec((tm, N), lambda m, s, seed: (m, 0)),  # f32 acc
        ),
        compiler_params=pltpu.CompilerParams(
            dimension_semantics=("parallel", "arbitrary")),
    )(seed_arr, x2d.astype(jnp.float32), w_bf16, b_sum)
    return out.astype(x2d.dtype)


def dropout_linear_module(x, weights, biases, *, dropout_prob, msd_average, seed):
    """Accepts (..., in_size) like nn.Linear; flattens leading dims for the kernel."""
    lead = x.shape[:-1]
    K = x.shape[-1]
    N = weights.shape[-1]
    out2d = dropout_linear(x.reshape(-1, K), weights, biases,
                           dropout_prob=dropout_prob,
                           msd_average=msd_average, seed=seed)
    return out2d.reshape(*lead, N)


if __name__ == "__main__":
    # Config analogous to cfg / config in the PyTorch module.
    batch, seq = 2, 8
    in_size, out_size = 32, 32
    dropout_sample_num = 4
    dropout_prob = 0.1
    msd_average = True
    initializer_range = 0.02

    key = jax.random.PRNGKey(0)
    kx, kw = jax.random.split(key)
    x = jax.random.normal(kx, (batch, seq, in_size), dtype=jnp.float32)

    # weight ~ N(0, initializer_range), bias = 0 (mirrors _init_linear_weights).
    # Stored as (S, in, out) == PyTorch weight (out, in) transposed.
    weights = (initializer_range *
               jax.random.normal(kw, (dropout_sample_num, in_size, out_size),
                                 dtype=jnp.float32))
    biases = jnp.zeros((dropout_sample_num, out_size), dtype=jnp.float32)

    # Sanity check: with p = 0 dropout is the identity, so the result must match
    # the averaged sum of the plain (bf16-matmul) linears.
    out_p0 = dropout_linear_module(x, weights, biases,
                                   dropout_prob=0.0,
                                   msd_average=msd_average, seed=1234)
    ref = jnp.einsum("bsk,ikn->ibsn",
                     x.astype(jnp.bfloat16), weights.astype(jnp.bfloat16),
                     preferred_element_type=jnp.float32)
    ref = (ref + biases[:, None, None, :]).sum(0) / dropout_sample_num
    np.testing.assert_allclose(np.asarray(out_p0), np.asarray(ref),
                               rtol=5e-2, atol=5e-3)

    # Actual run with dropout active (training-mode semantics).
    out = dropout_linear_module(x, weights, biases,
                                dropout_prob=dropout_prob,
                                msd_average=msd_average, seed=1234)
    out = jax.block_until_ready(out)
    assert out.shape == (batch, seq, out_size)
    assert bool(jnp.all(jnp.isfinite(out)))
    print("KERNEL_OK")
</pallas_src>

<mosaic_0001>
module attributes {stable_mosaic.version = 11 : i64} {
  func.func @_dropout_linear_kernel(%arg0: i32, %arg1: i32, %arg2: memref<1xi32, #tpu.memory_space<smem>>, %arg3: memref<16x32xf32, #tpu.memory_space<vmem>>, %arg4: memref<1x32x32xbf16, #tpu.memory_space<vmem>>, %arg5: memref<1x32xf32, #tpu.memory_space<vmem>>, %arg6: memref<16x32xf32, #tpu.memory_space<vmem>>) attributes {dimension_semantics = [#tpu.dimension_semantics<parallel>, #tpu.dimension_semantics<arbitrary>], iteration_bounds = array<i64: 1, 4>, scalar_prefetch = 1 : i64, scratch_operands = 0 : i64, tpu.core_type = #tpu.core_type<tc>, window_params = [{transform_indices = @transform_0, window_bounds = array<i64: 16, 32>}, {transform_indices = @transform_1, window_bounds = array<i64: 1, 32, 32>}, {pipeline_mode = #tpu.pipeline_mode<synchronous>, transform_indices = @transform_2, window_bounds = array<i64: 1, 32>}, {transform_indices = @transform_3, window_bounds = array<i64: 16, 32>}]} {
    %c0_i32 = arith.constant 0 : i32
    %0 = arith.cmpi eq, %arg1, %c0_i32 : i32
    %1 = arith.extui %0 : i1 to i32
    %c0_i32_0 = arith.constant 0 : i32
    %2 = arith.cmpi ne, %1, %c0_i32_0 : i32
    scf.if %2 {
      %cst_10 = arith.constant 0.000000e+00 : f32
      %14 = vector.broadcast %cst_10 : f32 to vector<16x32xf32>
      %c0_11 = arith.constant 0 : index
      %c0_12 = arith.constant 0 : index
      %15 = vector.load %arg6[%c0_11, %c0_12] : memref<16x32xf32, #tpu.memory_space<vmem>>, vector<16x32xf32>
      tpu.vector_store %arg6[%c0_11, %c0_12], %14 {strides = array<i32>} : memref<16x32xf32, #tpu.memory_space<vmem>>, vector<16x32xf32>,
    } else {
    }
    %c0 = arith.constant 0 : index
    %c0_1 = arith.constant 0 : index
    %3 = vector.load %arg3[%c0, %c0_1] : memref<16x32xf32, #tpu.memory_space<vmem>>, vector<16x32xf32>
    %c0_2 = arith.constant 0 : index
    %c0_3 = arith.constant 0 : index
    %4 = vector.load %arg6[%c0_2, %c0_3] : memref<16x32xf32, #tpu.memory_space<vmem>>, vector<16x32xf32>
    %5 = arith.truncf %3 : vector<16x32xf32> to vector<16x32xbf16>
    %c0_4 = arith.constant 0 : index
    %c0_5 = arith.constant 0 : index
    %c0_6 = arith.constant 0 : index
    %6 = vector.load %arg4[%c0_4, %c0_5, %c0_6] : memref<1x32x32xbf16, #tpu.memory_space<vmem>>, vector<1x32x32xbf16>
    %7 = vector.shape_cast %6 : vector<1x32x32xbf16> to vector<32x32xbf16>
    %cst = arith.constant dense<0.000000e+00> : vector<16x32xf32>
    %8 = tpu.matmul %5, %7, %cst {dimension_numbers = #tpu.dot_dimension_numbers<[1], [0], [0], [1], [0, 0, 1, 1], [], []>} : vector<16x32xbf16>, vector<32x32xbf16>, vector<16x32xf32> -> vector<16x32xf32>
    %9 = arith.addf %4, %8 : vector<16x32xf32>
    %c0_7 = arith.constant 0 : index
    %c0_8 = arith.constant 0 : index
    %10 = vector.load %arg6[%c0_7, %c0_8] : memref<16x32xf32, #tpu.memory_space<vmem>>, vector<16x32xf32>
    tpu.vector_store %arg6[%c0_7, %c0_8], %9 {strides = array<i32>} : memref<16x32xf32, #tpu.memory_space<vmem>>, vector<16x32xf32>,
    %c3_i32 = arith.constant 3 : i32
    %11 = arith.cmpi eq, %arg1, %c3_i32 : i32
    %12 = arith.extui %11 : i1 to i32
    %c0_i32_9 = arith.constant 0 : i32
    %13 = arith.cmpi ne, %12, %c0_i32_9 : i32
    scf.if %13 {
      %c0_10 = arith.constant 0 : index
      %c0_11 = arith.constant 0 : index
      %14 = vector.load %arg6[%c0_10, %c0_11] : memref<16x32xf32, #tpu.memory_space<vmem>>, vector<16x32xf32>
      %cst_12 = arith.constant 2.500000e-01 : f32
      %15 = vector.broadcast %cst_12 : f32 to vector<16x32xf32>
      %16 = arith.mulf %14, %15 : vector<16x32xf32>
      %c0_13 = arith.constant 0 : index
      %c0_14 = arith.constant 0 : index
      %17 = vector.load %arg5[%c0_13, %c0_14] : memref<1x32xf32, #tpu.memory_space<vmem>>, vector<1x32xf32>
      %18 = vector.broadcast %17 : vector<1x32xf32> to vector<16x32xf32>
      %19 = arith.addf %16, %18 : vector<16x32xf32>
      %c0_15 = arith.constant 0 : index
      %c0_16 = arith.constant 0 : index
      %20 = vector.load %arg6[%c0_15, %c0_16] : memref<16x32xf32, #tpu.memory_space<vmem>>, vector<16x32xf32>
      tpu.vector_store %arg6[%c0_15, %c0_16], %19 {strides = array<i32>} : memref<16x32xf32, #tpu.memory_space<vmem>>, vector<16x32xf32>,
    } else {
    }
    return
  }
  func.func @transform_0(%arg0: i32, %arg1: i32, %arg2: memref<1xi32, #tpu.memory_space<smem>>) -> (i32, i32) {
    %c0_i32 = arith.constant 0 : i32
    %c0_i32_0 = arith.constant 0 : i32
    return %arg0, %c0_i32 : i32, i32
  }
  func.func @transform_1(%arg0: i32, %arg1: i32, %arg2: memref<1xi32, #tpu.memory_space<smem>>) -> (i32, i32, i32) {
    %c0_i32 = arith.constant 0 : i32
    %c0_i32_0 = arith.constant 0 : i32
    %c0_i32_1 = arith.constant 0 : i32
    return %arg1, %c0_i32, %c0_i32_0 : i32, i32, i32
  }
  func.func @transform_2(%arg0: i32, %arg1: i32, %arg2: memref<1xi32, #tpu.memory_space<smem>>) -> (i32, i32) {
    %c0_i32 = arith.constant 0 : i32
    %c0_i32_0 = arith.constant 0 : i32
    %c0_i32_1 = arith.constant 0 : i32
    return %c0_i32, %c0_i32_0 : i32, i32
  }
  func.func @transform_3(%arg0: i32, %arg1: i32, %arg2: memref<1xi32, #tpu.memory_space<smem>>) -> (i32, i32) {
    %c0_i32 = arith.constant 0 : i32
    %c0_i32_0 = arith.constant 0 : i32
    return %arg0, %c0_i32 : i32, i32
  }
}

</mosaic_0001>

<bundles_post_ra>
// kernel: tpu_custom_call.1
= control target key start
LH: loop header
LB: loop body
LE: loop exit
PB: predicated region body
PF: predicated region fallthrough
CT: control target
= control target key end

     0   :  { %10 = vsyncpa [#allocation5], 0  ;;  %s797_s0 = inlined_call_operand.<no memory space> [shape: s32[1], index: 0, kind: input, shape index: {}]   ;;  %s798_s1 = inlined_call_operand.hbm [shape: f32[16,32], index: 1, kind: input, shape index: {}]   ;;  %s799_s2 = inlined_call_operand.hbm [shape: bf16[4,32,32], index: 2, kind: input, shape index: {}]   ;;  %s800_s3 = inlined_call_operand.vmem [shape: f32[1,32], index: 3, kind: input, shape index: {}]   ;;  %s801_s4 = inlined_call_operand.hbm [shape: f32[16,32], index: 4, kind: output, shape index: {}]  }
   0x1   :  { %11 = vsyncpa [#allocation8], 0 }
   0x2   :  { %13 = vsyncpa [#allocation8 + $0x1], 0 }
   0x3   :  { %14 = vsyncpa [#allocation6], 0  ;;  %s672_s15 = smov 0   ;;  %s674_s16 = smov 0  }
   0x4   :  { %s676_s0 = smov 0   ;;  %s678_s17 = smov 0  }
   0x5   :  { %s680_s18 = smov 0   ;;  %s682_s19 = smov 0  }
   0x6 LB: > { %s381_s20 = sadd.s32 4294967295, %s636_s19   ;;  %p78_p0 = scmp.ne.s32.totalorder %s620_s16, %s616_s15  ;;  %s636_s19 = sphi %s682_s19, %s20_s19   ;;  %s632_s18 = sphi %s680_s18, %s810_s18   ;;  %s628_s17 = sphi %s678_s17, %s809_s17   ;;  %s624_s0 = sphi %s676_s0, %s808_s0   ;;  %s620_s16 = sphi %s674_s16, %s807_s16   ;;  %s616_s15 = sphi %s672_s15, %s806_s15  }
   0x7   : > { %p704_p1 = scmp.eq.s32.totalorder %s381_s20, 0  ;;  %p382_p2 = scmp.ge.s32.totalorder %s636_s19, 1 }
   0x8   : > { %p136_p3 = scmp.lt.s32.totalorder %s636_s19, 5  ;;  %s150_s25 = sshll.u32 %s798_s1, 4  ;;  %s151_s25 = int_to_ptr.hbm [resolvable:$true] %s150_s25 }
   0x9   : > { %p712_p4 = por %p704_p1, %p78_p0  ;;  %s638_s27 = smov [#allocation4]  }
   0xa   : > { %p719_p5 = pnand %p382_p2, %p136_p3  ;;  %s152_s28 = sshll.u32 %s638_s27, 4  ;;  %s153_s28 = int_to_ptr.vmem [resolvable:$true] %s152_s28 }
   0xb   : > { %s639_s29 = smov 128   ;;  %s640_s30 = smov 8  }
   0xc   : > { %p419_p6 = pneg %p719_p5  ;;  %s29_s5 = sadd.s32 1, %s632_s18 }
   0xd   : > { %p30_p8 = scmp.ge.s32.totalorder %s29_s5, 4  ;;  %s65_s6 = sadd.s32 1, %s624_s0 }
   0xe   : > { %p420_p7 = pnand %p419_p6, %p704_p1  ;;  %p72_p9 = scmp.ne.s32.totalorder %s624_s0, %s620_s16 }
   0xf   : > { %p73_p10 = scmp.eq.s32.totalorder %s636_s19, 0  ;;  %s812_s5 = smov (%p30_p8, %s29_s5), 0 }
  0x10   : > { %422 = dma.hbm_to_vmem [thread:$0]  (!%p420_p7), %s151_s25, 256, %s153_s28, [#allocation5], %s639_s29, %s639_s29, %s640_s30  }
  0x11   : > { %p734_p11 = por %p73_p10, %p72_p9  ;;  %p428_p12 = scmp.lt.s32.totalorder %s636_s19, 4 }
  0x12   : > { %s62_s8 = ssub.s32 %s632_s18, %s812_s5  ;;  %s169_s9 = sand.u32 1, %s624_s0  }
  0x13   : > { %p63_p13 = scmp.eq.s32.totalorder %s62_s8, 0  ;;  %s385_s10 = sshll.u32 %s169_s9, 4 }
  0x14   : > { %s406_s11 = sshll.u32 %s632_s18, 4  ;;  %s173_s24 = scalar_lea.vmem [#allocation7], %s385_s10 }
  0x15   : > { %s744_s12 = scalar_select %p63_p13, %s624_s0, %s65_s6  }
  0x16   : > { %s178_s15 = scalar_lea.hbm %s799_s2, %s406_s11  ;;  %s181_s25 = sshll.u32 %s173_s24, 4  ;;  %s182_s25 = int_to_ptr.vmem [resolvable:$true] %s181_s25 }
  0x17   : > { %s179_s23 = sshll.u32 %s178_s15, 4  ;;  %p424_p0 = pnand %p428_p12, %p734_p11  ;;  %s180_s23 = int_to_ptr.hbm [resolvable:$true] %s179_s23 }
  0x18   : > { %s170_s27 = scalar_lea.sflag [#allocation8], %s169_s9  ;;  %s641_s28 = smov 64  }
  0x19   : > { %s642_s29 = smov 4   ;;  %193 = sbr.rel (%p719_p5) target bundleno = 208 (0xd0), region = 32 }
  0x1a   : > { %426 = dma.hbm_to_vmem [thread:$0]  (!%p424_p0), %s180_s23, 256, %s182_s25, %s170_s27, %s641_s28, %s641_s28, %s642_s29  }
  0x1e   : > { %603 = dma.done.wait (%p704_p1), [#allocation5], 256  }
  0x1f   : > { %605 = vsyncadd (%p704_p1), [#allocation5], 4294967040  ;;  %s200_s30 = sand.u32 1, %s620_s16  }
  0x20   : > { %s390_s6 = sshll.u32 %s200_s30, 4  ;;  %s201_s7 = scalar_lea.sflag [#allocation8], %s200_s30 }
  0x21   : > { %s204_s8 = scalar_lea.vmem [#allocation7], %s390_s6 }
  0x22   : > { %607 = dma.done.wait (%p712_p4), %s201_s7, 256  }
  0x23   : > { %609 = vsyncadd (%p712_p4), %s201_s7, 4294967040  ;;  %p391_p2 = scmp.ne.s32.totalorder %s628_s17, 0 }
  0x25   : > { %229 = sbr.rel (%p391_p2) target bundleno = 45 (0x2d), region = 44 }
  0x2a   : > { %vm230_vm0 = vcmask 261120   ;;  %v643_v0 = vmov 0.0  }
  0x2b   : > { %231 = vst.msk [vmem:[#allocation9] sm:$0xff] %vm230_vm0, %v643_v0 }
  0x2c   : > { %232 = vst.msk [vmem:[#allocation9 + $0x8] sm:$0xff] %vm230_vm0, %v643_v0 }
  0x2d PF: > { %v408_v1 = vld [vmem:[%s204_s8 + $0x8] sm:$0xff]  ;;  %v407_v2 = vld [vmem:[%s204_s8] sm:$0xff]  ;;  %vm254_vm1 = vcmask 261120   ;;  %p401_p1 = scmp.ne.s32.totalorder %s628_s17, 3 }
  0x2e   : > { %264 = vmatpush.bf16.msra.mxu0 %v408_v1  ;;  %v233_v3 = vld [vmem:[#allocation4] sm:$0xff]  ;;  %v234_v4 = vld [vmem:[#allocation4 + $0x8] sm:$0xff] }
  0x2f   : > { %v237_v5 = vpack.c.bf16 %v234_v4, %v233_v3 }
  0x32   : > { %265 = vmatpush.bf16.msra.mxu0 %v407_v2  ;;  %v235_v6 = vld [vmem:[#allocation9] sm:$0xff] }
  0x33   : > { %v236_v9 = vld [vmem:[#allocation9 + $0x8] sm:$0xff] }
  0x35   : > { %400 = vmatmul.msk.bf16.vlgmr.msra.gmra.mxu0 %vm254_vm1, %v237_v5 }
  0xb2   : > { %v267_v7 = vpop.f32.mrf.mxu0 }
  0xb3   : > { %v272_v8 = vadd.f32 %v267_v7, %v235_v6 }
  0xb5   : > { %274 = vst.msk [vmem:[#allocation9] sm:$0xff] %vm254_vm1, %v272_v8 }
  0xb9   : > { %279 = sbr.rel (%p401_p1) target bundleno = 202 (0xca), region = 48 }
  0xba   : > { %v269_v10 = vpop.f32.mrf.mxu0 }
  0xbb   : > { %v273_v11 = vadd.f32 %v269_v10, %v236_v9 }
  0xbd   : > { %275 = vst.msk [vmem:[#allocation9 + $0x8] sm:$0xff] %vm254_vm1, %v273_v11 }
  0xbe   : > { %v280_v12 = vld [vmem:[#allocation9] sm:$0xff]  ;;  %v489_v13 = vld [vmem:[%s800_s3] ss:$0 sm:$0xff] }
  0xbf   : > { %v282_v14 = vmul.f32 0.25, %v280_v12 }
  0xc1   : > { %v288_v17 = vadd.f32 %v489_v13, %v282_v14 }
  0xc3   : > { %290 = vst.msk [vmem:[#allocation9] sm:$0xff] %vm254_vm1, %v288_v17 }
  0xc4   : > { %v281_v15 = vld [vmem:[#allocation9 + $0x8] sm:$0xff] }
  0xc5   : > { %v283_v16 = vmul.f32 0.25, %v281_v15 }
  0xc7   : > { %v289_v18 = vadd.f32 %v489_v13, %v283_v16 }
  0xc9   : > { %291 = vst.msk [vmem:[#allocation9 + $0x8] sm:$0xff] %vm254_vm1, %v289_v18 }
  0xca PF: > { %p430_p3 = scmp.eq.s32.totalorder %s381_s20, 3  ;;  %s302_s9 = sshll.u32 %s801_s4, 4  ;;  %s303_s9 = int_to_ptr.hbm [resolvable:$true] %s302_s9 }
  0xcb   : > { %s644_s10 = smov [#allocation9]   ;;  %s645_s13 = smov 128  }
  0xcc   : > { %s300_s11 = sshll.u32 %s644_s10, 4  ;;  %s646_s14 = smov 8   ;;  %s301_s11 = int_to_ptr.vmem [resolvable:$true] %s300_s11 }
  0xcd   : > { %416 = dma.vmem_to_hbm [thread:$0]  (%p430_p3), %s301_s11, 256, %s303_s9, [#allocation6], %s645_s13, %s645_s13, %s646_s14  }
  0xce   : > { %611 = dma.done.wait (%p430_p3), [#allocation6], 256  }
  0xcf   : > { %613 = vsyncadd (%p430_p3), [#allocation6], 4294967040 }
  0xd0 PF: > { %s20_s19 = sadd.s32 1, %s636_s19   ;;  %s806_s15 = smov %s620_s16 }
  0xd1   : > { %p17_p4 = scmp.ge.s32.totalorder %s20_s19, 6   ;;  %s807_s16 = smov %s624_s0 }
  0xd2   : > { %s808_s0 = smov %s744_s12  ;;  %s809_s17 = smov %s632_s18 }
  0xd3   : > { %s810_s18 = smov %s812_s5  ;;  %19 = sbr.rel (!%p17_p4) target bundleno = 6 (0x6), region = 84 }
  0xd8   :  { %319 = vsyncpa [#allocation5], 1 }
  0xd9   :  { %321 = vsyncpa [#allocation5 + $0x1], 1 }
  0xda   :  { %322 = vsyncpa [#allocation8], 1 }
  0xdb   :  { %324 = vsyncpa [#allocation8 + $0x1], 1 }
  0xdc   :  { %325 = vsyncpa [#allocation6], 1 }
  0xdd   :  { %327 = vsyncpa [#allocation6 + $0x1], 1 }

</bundles_post_ra>
